<compile_context>
chip_gen: v6e
topology: v6e:2x2x1
jax: 0.10.0
libtpu: 0.0.40
codegen_flags: <defaults>
</compile_context>

<pallas_src>
import functools

import jax
import jax.numpy as jnp
from jax.experimental import pallas as pl
from jax.experimental.pallas import tpu as pltpu

LANE = 128      # TPU lane width (last dim of a vreg tile)
SUBLANE = 8     # TPU sublane width (second-to-last dim of a vreg tile, f32)


def _round_up(x, m):
    return (x + m - 1) // m * m


def _sublane_pack(dtype):
    """Rows per packed sublane group: 8 for 4-byte dtypes, 16 for 2-byte."""
    return SUBLANE * max(1, 4 // jnp.dtype(dtype).itemsize)


# ---------------------------------------------------------------------------
# Pallas kernel: fused double-Q MLP forward for one batch tile.
#   obs_ref:  [tb, kin]   (obs ++ ones-column, zero-padded; kin = slab W1 rows)
#   slab_ref: [kin + 256, 128] resident weight slab (W1 | W2 | W3, biases folded)
#   out_ref:  [tb, 128]   q1 in cols [0, A), q2 in cols [A, 2A)
# ---------------------------------------------------------------------------
def fused_double_q_kernel(obs_ref, slab_ref, out_ref):
    kin = obs_ref.shape[1]
    cdt = slab_ref.dtype

    x = obs_ref[...]
    if x.dtype != cdt:
        x = x.astype(cdt)

    # Static, sublane-aligned views into the resident slab (free, no copies).
    w1 = slab_ref[0:kin, :]                          # [kin, 128]
    w2 = slab_ref[kin:kin + LANE, :]                 # [128, 128]
    w3 = slab_ref[kin + LANE:kin + 2 * LANE, :]      # [128, 128]

    # Biases ride inside the matmuls via the ones-column / carry lane.
    h = jnp.maximum(jnp.dot(x, w1, preferred_element_type=jnp.float32), 0.0)
    h = jnp.maximum(
        jnp.dot(h.astype(cdt), w2, preferred_element_type=jnp.float32), 0.0)
    out = jnp.dot(h.astype(cdt), w3, preferred_element_type=jnp.float32)
    out_ref[...] = out.astype(out_ref.dtype)


# ---------------------------------------------------------------------------
# Parameter packing (done ONCE; the slab is reused across forward calls)
# ---------------------------------------------------------------------------
def pack_params(params, obs_dim, hidden_dim, action_dim, dtype=jnp.float32):
    """Fuse Q1/Q2 into block-diagonal weights with biases folded in, packed
    into one lane-dense slab of shape [kin + 2*128, 128] (dtype f32 or bf16).

    Slab rows:
      [0, kin)          W1 fused; row `obs_dim` holds (b1_q1 | b1_q2 | ... | 1)
      [kin, kin+128)    W2 block-diag; row 127 holds (b2_q1 | b2_q2 | ... | 1)
      [kin+128, +256)   W3 block-diag; row 127 holds (b3_q1 | b3_q2)
    Lane 127 of the hidden band is the 'carry' lane (constant 1 through ReLU).
    """
    H, A = hidden_dim, action_dim
    if 2 * H + 1 > LANE or 2 * A > LANE:
        raise NotImplementedError(
            "pack_params supports hidden_dim <= 63 and action_dim <= 64 "
            "(both fused heads + carry lane must fit one 128-lane band).")

    f32 = jnp.float32
    carry = LANE - 1                       # always-one lane in the hidden band
    row_align = _sublane_pack(dtype)       # keep slab row offsets aligned
    kin = _round_up(obs_dim + 1, row_align)  # +1 for the ones-column of obs
    one_col = obs_dim                        # which obs column the wrapper sets to 1

    # Layer 1: [kin, 128]
    w1 = jnp.zeros((kin, LANE), f32)
    w1 = w1.at[0:obs_dim, 0:H].set(params["q1_w1"].astype(f32))
    w1 = w1.at[0:obs_dim, H:2 * H].set(params["q2_w1"].astype(f32))
    w1 = w1.at[one_col, 0:H].set(params["q1_b1"].astype(f32).reshape(-1))
    w1 = w1.at[one_col, H:2 * H].set(params["q2_b1"].astype(f32).reshape(-1))
    w1 = w1.at[one_col, carry].set(1.0)    # carry lane := 1 after layer 1

    # Layer 2: [128, 128] block-diagonal
    w2 = jnp.zeros((LANE, LANE), f32)
    w2 = w2.at[0:H, 0:H].set(params["q1_w2"].astype(f32))
    w2 = w2.at[H:2 * H, H:2 * H].set(params["q2_w2"].astype(f32))
    w2 = w2.at[carry, 0:H].set(params["q1_b2"].astype(f32).reshape(-1))
    w2 = w2.at[carry, H:2 * H].set(params["q2_b2"].astype(f32).reshape(-1))
    w2 = w2.at[carry, carry].set(1.0)      # keep the carry lane at 1

    # Layer 3: [128, 128] block-diagonal (no carry needed after the last layer)
    w3 = jnp.zeros((LANE, LANE), f32)
    w3 = w3.at[0:H, 0:A].set(params["q1_w3"].astype(f32))
    w3 = w3.at[H:2 * H, A:2 * A].set(params["q2_w3"].astype(f32))
    w3 = w3.at[carry, 0:A].set(params["q1_b3"].astype(f32).reshape(-1))
    w3 = w3.at[carry, A:2 * A].set(params["q2_b3"].astype(f32).reshape(-1))

    slab = jnp.concatenate([w1, w2, w3], axis=0).astype(dtype)   # [kin+256, 128]
    meta = dict(obs_dim=obs_dim, hidden_dim=hidden_dim,
                action_dim=action_dim, kin=kin)
    return slab, meta


# ---------------------------------------------------------------------------
# Wrapper
# ---------------------------------------------------------------------------
@functools.partial(jax.jit, static_argnames=("action_dim", "max_batch_tile"))
def _fused_forward(obs, slab, *, action_dim, max_batch_tile):
    B = obs.shape[0]
    cdt = slab.dtype
    kin = slab.shape[0] - 2 * LANE          # W1 rows == padded obs width
    pack = _sublane_pack(cdt)

    # Cast obs to the slab compute dtype (halves obs DMA on the bf16 path).
    if obs.dtype != cdt:
        obs = obs.astype(cdt)
    # Append the ones-column (folds b1 into W1), zero-pad features to kin.
    obs = jnp.concatenate([obs, jnp.ones((B, 1), cdt)], axis=1)
    if obs.shape[1] < kin:
        obs = jnp.pad(obs, ((0, 0), (0, kin - obs.shape[1])))

    # Batch tile: multiple of the sublane pack, capped by max_batch_tile.
    tb = min(_round_up(max_batch_tile, pack), _round_up(B, pack))
    bp = _round_up(B, tb)
    if bp != B:
        obs = jnp.pad(obs, ((0, bp - B), (0, 0)))
    grid = (bp // tb,)
    slab_rows = slab.shape[0]

    flops = 2 * bp * (kin * LANE + 2 * LANE * LANE)
    bytes_accessed = (obs.size * obs.dtype.itemsize
                      + slab.size * slab.dtype.itemsize
                      + bp * LANE * 4)

    out = pl.pallas_call(
        fused_double_q_kernel,
        out_shape=jax.ShapeDtypeStruct((bp, LANE), jnp.float32),
        grid_spec=pltpu.PrefetchScalarGridSpec(
            num_scalar_prefetch=0,
            grid=grid,
            in_specs=[
                # obs tiles stream (double-buffered) along the batch grid.
                pl.BlockSpec((tb, kin), lambda i: (i, 0)),
                # Weight slab: constant index_map -> DMAed once, stays resident.
                pl.BlockSpec((slab_rows, LANE), lambda i: (0, 0)),
            ],
            out_specs=pl.BlockSpec((tb, LANE), lambda i: (i, 0)),
        ),
        compiler_params=pltpu.CompilerParams(
            dimension_semantics=("parallel",)),   # megacore split on v7x
        cost_estimate=pl.CostEstimate(
            flops=flops, transcendentals=0, bytes_accessed=bytes_accessed),
    )(obs, slab)

    q1 = out[:B, :action_dim]
    q2 = out[:B, action_dim:2 * action_dim]
    return q1, q2


def discrete_double_q_critic(obs, packed_params, max_batch_tile=512):
    """obs: [B, obs_dim] float32 in [-1, 1]; packed_params from pack_params()."""
    slab, meta = packed_params
    assert obs.shape[1] == meta["obs_dim"]
    return _fused_forward(obs, slab,
                          action_dim=meta["action_dim"],
                          max_batch_tile=max_batch_tile)


# ---------------------------------------------------------------------------
# Deterministic parameter initialization (mirrors mlp() layer shapes)
# ---------------------------------------------------------------------------
def init_params(key, obs_dim, hidden_dim, action_dim):
    """Weights ~ small normal, biases small normal. PyTorch nn.Linear stores W
    as (out, in); we store the transpose (in, out) so the math is x @ W + b."""
    def linear(k, fan_in, fan_out):
        kw, kb = jax.random.split(k)
        w = 0.1 * jax.random.normal(kw, (fan_in, fan_out), dtype=jnp.float32)
        b = 0.1 * jax.random.normal(kb, (1, fan_out), dtype=jnp.float32)
        return w, b

    keys = jax.random.split(key, 6)
    p = {}
    p["q1_w1"], p["q1_b1"] = linear(keys[0], obs_dim, hidden_dim)
    p["q1_w2"], p["q1_b2"] = linear(keys[1], hidden_dim, hidden_dim)
    p["q1_w3"], p["q1_b3"] = linear(keys[2], hidden_dim, action_dim)
    p["q2_w1"], p["q2_b1"] = linear(keys[3], obs_dim, hidden_dim)
    p["q2_w2"], p["q2_b2"] = linear(keys[4], hidden_dim, hidden_dim)
    p["q2_w3"], p["q2_b3"] = linear(keys[5], obs_dim and hidden_dim, action_dim)
    return p


def reference_forward(obs, params):
    """Pure-JAX reference matching the PyTorch MLP semantics (unfused),
    computed at HIGHEST matmul precision for a stable comparison target."""
    dot = functools.partial(jnp.dot, precision=jax.lax.Precision.HIGHEST)

    def mlp_fwd(x, w1, b1, w2, b2, w3, b3):
        h = jnp.maximum(dot(x, w1) + b1, 0.0)
        h = jnp.maximum(dot(h, w2) + b2, 0.0)
        return dot(h, w3) + b3

    q1 = mlp_fwd(obs, params["q1_w1"], params["q1_b1"],
                 params["q1_w2"], params["q1_b2"],
                 params["q1_w3"], params["q1_b3"])
    q2 = mlp_fwd(obs, params["q2_w1"], params["q2_b1"],
                 params["q2_w2"], params["q2_b2"],
                 params["q2_w3"], params["q2_b3"])
    return q1, q2


if __name__ == "__main__":
    # model_cfg-equivalent small shapes:
    #   obs_shape=(16,), mlp_cfg.hidden_dim=32, hidden_depth=2, action_dim=4
    B, OBS_DIM, HIDDEN, ACTION_DIM = 2, 16, 32, 4

    key = jax.random.PRNGKey(0)
    k_obs, k_param, k_obs2 = jax.random.split(key, 3)

    # obs values in [-1, 1] so the module's `assert max(obs) <= 1.0` holds.
    obs = jax.random.uniform(k_obs, (B, OBS_DIM), dtype=jnp.float32,
                             minval=-1.0, maxval=1.0)
    params = init_params(k_param, OBS_DIM, HIDDEN, ACTION_DIM)

    # Mirror the PyTorch `assert torch.max(obs) <= 1.0` once here (kept out of
    # the jitted forward path to avoid a per-call device sync).
    assert float(jnp.max(obs)) <= 1.0

    # --- f32 path (exact module semantics) ---------------------------------
    packed_f32 = pack_params(params, OBS_DIM, HIDDEN, ACTION_DIM,
                             dtype=jnp.float32)
    packed_f32 = (jax.block_until_ready(packed_f32[0]), packed_f32[1])

    q1, q2 = discrete_double_q_critic(obs, packed_f32)
    q1, q2 = jax.block_until_ready((q1, q2))
    q1_ref, q2_ref = reference_forward(obs, params)
    assert q1.shape == (B, ACTION_DIM) and q2.shape == (B, ACTION_DIM)
    # Tolerance covers TPU f32-matmul pass-count differences vs the reference.
    assert jnp.allclose(q1, q1_ref, atol=2e-3, rtol=2e-3)
    assert jnp.allclose(q2, q2_ref, atol=2e-3, rtol=2e-3)

    # --- multi-tile batch grid + batch padding path -------------------------
    B2 = 300
    obs2 = jax.random.uniform(k_obs2, (B2, OBS_DIM), dtype=jnp.float32,
                              minval=-1.0, maxval=1.0)
    q1b, q2b = discrete_double_q_critic(obs2, packed_f32, max_batch_tile=128)
    q1b, q2b = jax.block_until_ready((q1b, q2b))
    q1b_ref, q2b_ref = reference_forward(obs2, params)
    assert q1b.shape == (B2, ACTION_DIM) and q2b.shape == (B2, ACTION_DIM)
    assert jnp.allclose(q1b, q1b_ref, atol=2e-3, rtol=2e-3)
    assert jnp.allclose(q2b, q2b_ref, atol=2e-3, rtol=2e-3)

    # --- bf16 weight/activation path (native MXU dtype, f32 accumulation) ---
    packed_bf16 = pack_params(params, OBS_DIM, HIDDEN, ACTION_DIM,
                              dtype=jnp.bfloat16)
    q1c, q2c = discrete_double_q_critic(obs2, packed_bf16, max_batch_tile=128)
    q1c, q2c = jax.block_until_ready((q1c, q2c))
    assert jnp.allclose(q1c, q1b_ref, atol=3e-2, rtol=3e-2)
    assert jnp.allclose(q2c, q2b_ref, atol=3e-2, rtol=3e-2)

    print("KERNEL_OK")
</pallas_src>

<mosaic_0001>
module attributes {stable_mosaic.version = 11 : i64} {
  func.func @fused_double_q_kernel(%arg0: i32, %arg1: memref<8x24xf32, #tpu.memory_space<vmem>>, %arg2: memref<280x128xf32, #tpu.memory_space<vmem>>, %arg3: memref<8x128xf32, #tpu.memory_space<vmem>>) attributes {dimension_semantics = [#tpu.dimension_semantics<parallel>], iteration_bounds = array<i64: 1>, scalar_prefetch = 0 : i64, scratch_operands = 0 : i64, tpu.core_type = #tpu.core_type<tc>, window_params = [{transform_indices = @transform_0, window_bounds = array<i64: 8, 24>}, {pipeline_mode = #tpu.pipeline_mode<synchronous>, transform_indices = @transform_1, window_bounds = array<i64: 280, 128>}, {transform_indices = @transform_2, window_bounds = array<i64: 8, 128>}]} {
    %c0 = arith.constant 0 : index
    %c0_0 = arith.constant 0 : index
    %0 = vector.load %arg1[%c0, %c0_0] : memref<8x24xf32, #tpu.memory_space<vmem>>, vector<8x24xf32>
    %c0_1 = arith.constant 0 : index
    %c0_2 = arith.constant 0 : index
    %1 = vector.load %arg2[%c0_1, %c0_2] : memref<280x128xf32, #tpu.memory_space<vmem>>, vector<24x128xf32>
    %c24 = arith.constant 24 : index
    %c0_3 = arith.constant 0 : index
    %2 = vector.load %arg2[%c24, %c0_3] : memref<280x128xf32, #tpu.memory_space<vmem>>, vector<128x128xf32>
    %c152 = arith.constant 152 : index
    %c0_4 = arith.constant 0 : index
    %3 = vector.load %arg2[%c152, %c0_4] : memref<280x128xf32, #tpu.memory_space<vmem>>, vector<128x128xf32>
    %cst = arith.constant dense<0.000000e+00> : vector<8x128xf32>
    %4 = tpu.matmul %0, %1, %cst {dimension_numbers = #tpu.dot_dimension_numbers<[1], [0], [0], [1], [0, 0, 1, 1], [], []>} : vector<8x24xf32>, vector<24x128xf32>, vector<8x128xf32> -> vector<8x128xf32>
    %cst_5 = arith.constant 0.000000e+00 : f32
    %5 = vector.broadcast %cst_5 : f32 to vector<8x128xf32>
    %6 = arith.maximumf %4, %5 : vector<8x128xf32>
    %cst_6 = arith.constant dense<0.000000e+00> : vector<8x128xf32>
    %7 = tpu.matmul %6, %2, %cst_6 {dimension_numbers = #tpu.dot_dimension_numbers<[1], [0], [0], [1], [0, 0, 1, 1], [], []>} : vector<8x128xf32>, vector<128x128xf32>, vector<8x128xf32> -> vector<8x128xf32>
    %cst_7 = arith.constant 0.000000e+00 : f32
    %8 = vector.broadcast %cst_7 : f32 to vector<8x128xf32>
    %9 = arith.maximumf %7, %8 : vector<8x128xf32>
    %cst_8 = arith.constant dense<0.000000e+00> : vector<8x128xf32>
    %10 = tpu.matmul %9, %3, %cst_8 {dimension_numbers = #tpu.dot_dimension_numbers<[1], [0], [0], [1], [0, 0, 1, 1], [], []>} : vector<8x128xf32>, vector<128x128xf32>, vector<8x128xf32> -> vector<8x128xf32>
    %c0_9 = arith.constant 0 : index
    %c0_10 = arith.constant 0 : index
    %11 = vector.load %arg3[%c0_9, %c0_10] : memref<8x128xf32, #tpu.memory_space<vmem>>, vector<8x128xf32>
    tpu.vector_store %arg3[%c0_9, %c0_10], %10 {strides = array<i32>} : memref<8x128xf32, #tpu.memory_space<vmem>>, vector<8x128xf32>,
    return
  }
  func.func @transform_0(%arg0: i32) -> (i32, i32) {
    %c0_i32 = arith.constant 0 : i32
    %c0_i32_0 = arith.constant 0 : i32
    return %arg0, %c0_i32 : i32, i32
  }
  func.func @transform_1(%arg0: i32) -> (i32, i32) {
    %c0_i32 = arith.constant 0 : i32
    %c0_i32_0 = arith.constant 0 : i32
    %c0_i32_1 = arith.constant 0 : i32
    return %c0_i32, %c0_i32_0 : i32, i32
  }
  func.func @transform_2(%arg0: i32) -> (i32, i32) {
    %c0_i32 = arith.constant 0 : i32
    %c0_i32_0 = arith.constant 0 : i32
    return %arg0, %c0_i32 : i32, i32
  }
}

</mosaic_0001>

<bundles_post_ra>
// kernel: _fused_forward.1
= control target key start
LH: loop header
LB: loop body
LE: loop exit
PB: predicated region body
PF: predicated region fallthrough
CT: control target
= control target key end

     0   :  { %7 = vsyncpa [#allocation3], 0  ;;  %s428_s9 = smov [#allocation2]   ;;  %s498_s0 = inlined_call_operand.vmem [shape: f32[8,24], index: 0, kind: input, shape index: {}]   ;;  %s499_s1 = inlined_call_operand.hbm [shape: f32[280,128], index: 1, kind: input, shape index: {}]   ;;  %s500_s2 = inlined_call_operand.vmem [shape: f32[8,128], index: 2, kind: output, shape index: {}]  }
   0x1   :  { %s15_s10 = sshll.u32 %s428_s9, 4  ;;  %s16_s10 = int_to_ptr.vmem [resolvable:$true] %s15_s10 }
   0x2   :  { %s414_s11 = scalar_lea.vmem %s16_s10, 4480  ;;  %p419_p1 = scmp.lt.s32.totalorder %s16_s10, %s16_s10 }
   0x3   :  { %p415_p0 = scmp.ne.s32.totalorder %s16_s10, %s414_s11  ;;  %p420_p2 = scmp.lt.s32.totalorder %s414_s11, %s414_s11 }
   0x5   :  { %p421_p3 = por %p420_p2, %p419_p1 }
   0x7   :  { %p422_p4 = pnand %p421_p3, %p415_p0 }
   0x9   :  { %425 = shalt.err (!%p422_p4)
}
   0xa   :  { %s429_s12 = smov 128   ;;  %s430_s13 = smov 8  }
   0xb   :  { %21 = dma.hbm_to_vmem [thread:$0]  %s499_s1, 4480, %s16_s10, [#allocation3], %s429_s12, %s429_s12, %s430_s13  }
   0xc   :  { %426 = dma.done.wait [#allocation3], 4480  }
   0xd   :  { %427 = vsyncadd [#allocation3], 4294962816  ;;  %v431_v0 = vmov 0.0   ;;  %vm432_vm0 = vmmov 0   ;;  %v28_v1 = vld [vmem:[#allocation2 + $0x10] sm:$0xff]  ;;  %v27_v2 = vld [vmem:[#allocation2 + $0x8] sm:$0xff] }
   0xe   :  { %322 = vmatprep.subr.mxu0 %v431_v0  ;;  %328 = vmatprep.mubr.msk.f32.mxu0 %vm432_vm0, %v431_v0  ;;  %v44_v3 = vld [vmem:[#allocation2 + $0x90] sm:$0xff]  ;;  %v43_v4 = vld [vmem:[#allocation2 + $0x88] sm:$0xff]  ;;  %v26_v5 = vld [vmem:[#allocation2] sm:$0xff]  ;;  %vm61_vm1 = vcmask 195584  }
   0xf   :  { %331 = vmatprep.subr.mxu1 %v431_v0  ;;  %363 = vmatprep.mubr.msk.f32.mxu1 %vm432_vm0, %v431_v0  ;;  %v25_v6 = vld [vmem:[%s498_s0] sm:$0xff]  ;;  %v41_v8 = vld [vmem:[#allocation2 + $0x78] sm:$0xff]  ;;  %v40_v9 = vld [vmem:[#allocation2 + $0x70] sm:$0xff] }
  0x10   :  { %323 = vmatpush3.msra.mxu0 %v28_v1  ;;  %332 = vmatpush3.msra.mxu1 %v44_v3  ;;  %v42_v7 = vld [vmem:[#allocation2 + $0x80] sm:$0xff]  ;;  %v39_v10 = vld [vmem:[#allocation2 + $0x68] sm:$0xff]  ;;  %v37_v12 = vld [vmem:[#allocation2 + $0x58] sm:$0xff] }
  0x11   :  { %324 = vmatprep.subr.mxu0 %v431_v0  ;;  %333 = vmatprep.subr.mxu1 %v431_v0  ;;  %v38_v11 = vld [vmem:[#allocation2 + $0x60] sm:$0xff]  ;;  %v36_v13 = vld [vmem:[#allocation2 + $0x50] sm:$0xff]  ;;  %v35_v14 = vld [vmem:[#allocation2 + $0x48] sm:$0xff] }
  0x12   :  { %325 = vmatpush3.msra.mxu0 %v27_v2  ;;  %334 = vmatpush3.msra.mxu1 %v43_v4  ;;  %v34_v15 = vld [vmem:[#allocation2 + $0x40] sm:$0xff]  ;;  %v33_v16 = vld [vmem:[#allocation2 + $0x38] sm:$0xff]  ;;  %v32_v17 = vld [vmem:[#allocation2 + $0x30] sm:$0xff] }
  0x13   :  { %326 = vmatprep.subr.mxu0 %v431_v0  ;;  %335 = vmatprep.subr.mxu1 %v431_v0  ;;  %v31_v18 = vld [vmem:[#allocation2 + $0x28] sm:$0xff]  ;;  %v30_v19 = vld [vmem:[#allocation2 + $0x20] sm:$0xff]  ;;  %v29_v20 = vld [vmem:[#allocation2 + $0x18] sm:$0xff] }
  0x14   :  { %327 = vmatpush3.msra.mxu0 %v26_v5  ;;  %336 = vmatpush3.msra.mxu1 %v42_v7  ;;  %v60_v21 = vld [vmem:[#allocation2 + $0x110] sm:$0xff]  ;;  %v59_v22 = vld [vmem:[#allocation2 + $0x108] sm:$0xff]  ;;  %v58_v23 = vld [vmem:[#allocation2 + $0x100] sm:$0xff] }
  0x15   :  { %329 = vmatmul.mubr.msk.f32.vlgmr.msra.gmra.mxu0 %vm61_vm1, %v25_v6  ;;  %337 = vmatprep.subr.mxu1 %v431_v0  ;;  %v57_v24 = vld [vmem:[#allocation2 + $0xf8] sm:$0xff]  ;;  %v56_v25 = vld [vmem:[#allocation2 + $0xf0] sm:$0xff]  ;;  %v55_v26 = vld [vmem:[#allocation2 + $0xe8] sm:$0xff] }
  0x16   :  { %366 = vmatprep.subr.mxu0 %v431_v0  ;;  %338 = vmatpush3.msra.mxu1 %v41_v8  ;;  %v54_v27 = vld [vmem:[#allocation2 + $0xe0] sm:$0xff]  ;;  %v53_v28 = vld [vmem:[#allocation2 + $0xd8] sm:$0xff]  ;;  %v52_v29 = vld [vmem:[#allocation2 + $0xd0] sm:$0xff] }
  0x17   :  { %398 = vmatprep.mubr.msk.f32.mxu0 %vm432_vm0, %v431_v0  ;;  %339 = vmatprep.subr.mxu1 %v431_v0  ;;  %v51_v30 = vld [vmem:[#allocation2 + $0xc8] sm:$0xff]  ;;  %v50_v31 = vld [vmem:[#allocation2 + $0xc0] sm:$0xff]  ;;  %v49_v32 = vld [vmem:[#allocation2 + $0xb8] sm:$0xff] }
  0x18   :  { %340 = vmatpush3.msra.mxu1 %v40_v9  ;;  %367 = vmatpush3.msra.mxu0 %v60_v21  ;;  %v48_v33 = vld [vmem:[#allocation2 + $0xb0] sm:$0xff]  ;;  %v47_v34 = vld [vmem:[#allocation2 + $0xa8] sm:$0xff]  ;;  %v46_v38 = vld [vmem:[#allocation2 + $0xa0] sm:$0xff] }
  0x19   :  { %341 = vmatprep.subr.mxu1 %v431_v0  ;;  %368 = vmatprep.subr.mxu0 %v431_v0  ;;  %v45_v39 = vld [vmem:[#allocation2 + $0x98] sm:$0xff] }
  0x1a   :  { %342 = vmatpush3.msra.mxu1 %v39_v10  ;;  %369 = vmatpush3.msra.mxu0 %v59_v22 }
  0x1b   :  { %343 = vmatprep.subr.mxu1 %v431_v0  ;;  %370 = vmatprep.subr.mxu0 %v431_v0 }
  0x1c   :  { %344 = vmatpush3.msra.mxu1 %v38_v11  ;;  %371 = vmatpush3.msra.mxu0 %v58_v23 }
  0x1d   :  { %345 = vmatprep.subr.mxu1 %v431_v0  ;;  %372 = vmatprep.subr.mxu0 %v431_v0 }
  0x1e   :  { %346 = vmatpush3.msra.mxu1 %v37_v12  ;;  %373 = vmatpush3.msra.mxu0 %v57_v24 }
  0x1f   :  { %347 = vmatprep.subr.mxu1 %v431_v0  ;;  %374 = vmatprep.subr.mxu0 %v431_v0 }
  0x20   :  { %348 = vmatpush3.msra.mxu1 %v36_v13  ;;  %375 = vmatpush3.msra.mxu0 %v56_v25 }
  0x21   :  { %349 = vmatprep.subr.mxu1 %v431_v0  ;;  %376 = vmatprep.subr.mxu0 %v431_v0 }
  0x22   :  { %350 = vmatpush3.msra.mxu1 %v35_v14  ;;  %377 = vmatpush3.msra.mxu0 %v55_v26 }
  0x23   :  { %351 = vmatprep.subr.mxu1 %v431_v0  ;;  %378 = vmatprep.subr.mxu0 %v431_v0 }
  0x24   :  { %352 = vmatpush3.msra.mxu1 %v34_v15  ;;  %379 = vmatpush3.msra.mxu0 %v54_v27 }
  0x25   :  { %353 = vmatprep.subr.mxu1 %v431_v0  ;;  %380 = vmatprep.subr.mxu0 %v431_v0 }
  0x26   :  { %354 = vmatpush3.msra.mxu1 %v33_v16  ;;  %381 = vmatpush3.msra.mxu0 %v53_v28 }
  0x27   :  { %355 = vmatprep.subr.mxu1 %v431_v0  ;;  %382 = vmatprep.subr.mxu0 %v431_v0 }
  0x28   :  { %356 = vmatpush3.msra.mxu1 %v32_v17  ;;  %383 = vmatpush3.msra.mxu0 %v52_v29 }
  0x29   :  { %357 = vmatprep.subr.mxu1 %v431_v0  ;;  %384 = vmatprep.subr.mxu0 %v431_v0 }
  0x2a   :  { %358 = vmatpush3.msra.mxu1 %v31_v18  ;;  %385 = vmatpush3.msra.mxu0 %v51_v30 }
  0x2b   :  { %359 = vmatprep.subr.mxu1 %v431_v0  ;;  %386 = vmatprep.subr.mxu0 %v431_v0 }
  0x2c   :  { %360 = vmatpush3.msra.mxu1 %v30_v19  ;;  %387 = vmatpush3.msra.mxu0 %v50_v31 }
  0x2d   :  { %361 = vmatprep.subr.mxu1 %v431_v0  ;;  %388 = vmatprep.subr.mxu0 %v431_v0 }
  0x2e   :  { %362 = vmatpush3.msra.mxu1 %v29_v20  ;;  %389 = vmatpush3.msra.mxu0 %v49_v32 }
  0x2f   :  { %390 = vmatprep.subr.mxu0 %v431_v0 }
  0x30   :  { %391 = vmatpush3.msra.mxu0 %v48_v33 }
  0x31   :  { %392 = vmatprep.subr.mxu0 %v431_v0 }
  0x32   :  { %393 = vmatpush3.msra.mxu0 %v47_v34 }
  0x33   :  { %394 = vmatprep.subr.mxu0 %v431_v0 }
  0x34   :  { %395 = vmatpush3.msra.mxu0 %v46_v38 }
  0x35   :  { %396 = vmatprep.subr.mxu0 %v431_v0 }
  0x36   :  { %397 = vmatpush3.msra.mxu0 %v45_v39 }
  0xd5   :  { %v131_v35 = vpop.f32.mrf.mxu0 }
  0xd6   :  { %v135_v36 = vmax.f32 %v131_v35, 0.0 }
  0xd7   :  { %v330_v37 = vpop.f32.mrf.mxu0 }
  0xd8   :  { %364 = vmatmul.mubr.f32.vlgmr.msra.gmra.mxu1 %v135_v36 }
 0x198   :  { %v202_v40 = vpop.f32.mrf.mxu1 }
 0x199   :  { %v206_v41 = vmax.f32 %v202_v40, 0.0 }
 0x19a   :  { %v365_v42 = vpop.f32.mrf.mxu1 }
 0x19b   :  { %399 = vmatmul.mubr.f32.vlgmr.msra.gmra.mxu0 %v206_v41 }
 0x25b   :  { %v273_v43 = vpop.f32.mrf.mxu0 }
 0x25c   :  { %277 = vst [vmem:[%s500_s2] sm:$0xff] %v273_v43 }
 0x25d   :  { %v400_v44 = vpop.f32.mrf.mxu0 }
 0x25e   :  { %282 = vsyncpa [#allocation3], 1 }

</bundles_post_ra>
